<compile_context>
chip_gen: v7x
topology: tpu7x:2x2x1
jax: 0.10.0
libtpu: 0.0.40
codegen_flags: <defaults>
</compile_context>

<pallas_src>
import functools

import jax
import jax.numpy as jnp
from jax.experimental import pallas as pl
from jax.experimental.pallas import tpu as pltpu

LANE = 128       # vreg lane width
ROW_ALIGN = 16   # batch-tile row alignment (sublane-safe for f32 and bf16)


def _round_up(x, m):
    return ((x + m - 1) // m) * m


def policy_mlp_kernel(x_ref, w1_ref, b1_ref, w2_ref, b2_ref, w3_ref, b3_ref,
                      out_ref):
    # fc1 + ReLU   (MXU matmul, f32 accumulate; bias/ReLU on the VPU in f32)
    h1 = jnp.dot(x_ref[...], w1_ref[...], preferred_element_type=jnp.float32)
    h1 = jnp.maximum(h1 + b1_ref[...], 0.0).astype(w2_ref.dtype)
    # fc2 + ReLU
    h2 = jnp.dot(h1, w2_ref[...], preferred_element_type=jnp.float32)
    h2 = jnp.maximum(h2 + b2_ref[...], 0.0).astype(w3_ref.dtype)
    # fc3 (no activation); real n_actions lane width -> (tb, n_actions) store
    out = jnp.dot(h2, w3_ref[...], preferred_element_type=jnp.float32)
    out_ref[...] = (out + b3_ref[...]).astype(out_ref.dtype)


def prepare_params(params, compute_dtype=jnp.bfloat16):
    """Pad/cast parameters ONCE (at init / after each optimizer step).

    params: dict with weights pre-transposed to [in, out] relative to PyTorch
    nn.Linear storage: w1 [in,fc1], b1 [fc1], w2 [fc1,fc2], b2 [fc2],
    w3 [fc2,n_actions], b3 [n_actions].

    Hidden lane dims (fc1, fc2) are zero-padded to multiples of 128 (exact:
    zero columns/rows contribute nothing). The input K dim and the n_actions
    output dim keep their real widths. Weights are cast to compute_dtype
    (bf16 default -> native MXU rate); biases stay f32 (added after the f32
    accumulation).
    """
    w1, b1, w2, b2, w3, b3 = (params["w1"], params["b1"], params["w2"],
                              params["b2"], params["w3"], params["b3"])
    in_dim, fc1 = w1.shape
    fc1_b, fc2 = w2.shape
    fc2_b, n_actions = w3.shape
    # Guard against passing PyTorch's native [out, in] layout.
    assert fc1_b == fc1 and fc2_b == fc2, (
        "weights must be pre-transposed to [in, out]")
    assert b1.shape == (fc1,) and b2.shape == (fc2,) and b3.shape == (n_actions,)

    h1_p = _round_up(fc1, LANE)
    h2_p = _round_up(fc2, LANE)

    f32 = jnp.float32
    return dict(
        w1=jnp.pad(w1, ((0, 0), (0, h1_p - fc1))).astype(compute_dtype),
        b1=jnp.pad(b1.reshape(1, -1), ((0, 0), (0, h1_p - fc1))).astype(f32),
        w2=jnp.pad(w2, ((0, h1_p - fc1), (0, h2_p - fc2))).astype(compute_dtype),
        b2=jnp.pad(b2.reshape(1, -1), ((0, 0), (0, h2_p - fc2))).astype(f32),
        w3=jnp.pad(w3, ((0, h2_p - fc2), (0, 0))).astype(compute_dtype),
        b3=b3.reshape(1, -1).astype(f32),
    )


@functools.partial(jax.jit,
                   static_argnames=("block_batch", "vmem_limit_bytes"))
def policy_network_forward(state, padded_params, *, block_batch=512,
                           vmem_limit_bytes=32 * 1024 * 1024):
    """state: [B, input_dim] f32.  padded_params: output of prepare_params."""
    w1, b1, w2, b2, w3, b3 = (padded_params[k]
                              for k in ("w1", "b1", "w2", "b2", "w3", "b3"))
    B, in_dim = state.shape
    assert in_dim == w1.shape[0], "state last dim must match w1 fan-in"
    h1_p, h2_p, n_actions = w1.shape[1], w2.shape[1], w3.shape[1]
    compute_dtype = w1.dtype

    # --- batch tiling ------------------------------------------------------
    # Tiny batch -> one row-aligned tile. Otherwise split into >= 2 tiles
    # (both v7x TensorCores get work via the "parallel" grid axis), capped at
    # block_batch rows per tile to amortize per-grid-step overhead.
    if B <= 2 * ROW_ALIGN:
        tb = _round_up(B, ROW_ALIGN)
    else:
        tb = min(block_batch, _round_up(pl.cdiv(B, 2), ROW_ALIGN))
    b_p = _round_up(B, tb)
    grid = (b_p // tb,)

    # Only row padding (if any) + dtype cast; no lane padding of x.
    x = state.astype(compute_dtype)
    if b_p != B:
        x = jnp.pad(x, ((0, b_p - B), (0, 0)))

    # Weights / biases: same block every grid step -> stay VMEM-resident.
    def resident(shape):
        return pl.BlockSpec(shape, lambda i: (0, 0))

    w_bytes = jnp.dtype(compute_dtype).itemsize
    cost = pl.CostEstimate(
        flops=2 * b_p * (in_dim * h1_p + h1_p * h2_p + h2_p * n_actions),
        transcendentals=0,
        bytes_accessed=(x.size * w_bytes
                        + (w1.size + w2.size + w3.size) * w_bytes
                        + (b1.size + b2.size + b3.size) * 4
                        + b_p * n_actions * 4),
    )

    out_padded = pl.pallas_call(
        policy_mlp_kernel,
        out_shape=jax.ShapeDtypeStruct((b_p, n_actions), jnp.float32),
        grid=grid,
        in_specs=[
            pl.BlockSpec((tb, in_dim), lambda i: (i, 0)),   # streamed activations
            resident((in_dim, h1_p)), resident((1, h1_p)),
            resident((h1_p, h2_p)), resident((1, h2_p)),
            resident((h2_p, n_actions)), resident((1, n_actions)),
        ],
        out_specs=pl.BlockSpec((tb, n_actions), lambda i: (i, 0)),
        compiler_params=pltpu.CompilerParams(
            dimension_semantics=("parallel",),   # megacore sharding on v7x
            vmem_limit_bytes=vmem_limit_bytes,
        ),
        cost_estimate=cost,
    )(x, w1, b1, w2, b2, w3, b3)

    # Only padded rows to drop; columns are already the real n_actions.
    return out_padded[:B] if b_p != B else out_padded


def init_linear(key, fan_in, fan_out):
    """PyTorch-style nn.Linear init: U(-1/sqrt(fan_in), 1/sqrt(fan_in)).
    Returns (W [fan_in, fan_out] pre-transposed, b [fan_out])."""
    kw, kb = jax.random.split(key)
    bound = 1.0 / jnp.sqrt(jnp.float32(fan_in))
    w = jax.random.uniform(kw, (fan_in, fan_out), jnp.float32, -bound, bound)
    b = jax.random.uniform(kb, (fan_out,), jnp.float32, -bound, bound)
    return w, b


def _reference(state, p):
    h = jnp.maximum(state @ p["w1"] + p["b1"], 0.0)
    h = jnp.maximum(h @ p["w2"] + p["b2"], 0.0)
    return h @ p["w3"] + p["b3"]


if __name__ == "__main__":
    # Shapes consistent with the module: input_dims=(16,), fc1=32, fc2=32,
    # n_actions=4; small batch=8 plus a multi-tile batch to exercise the grid.
    input_dim, fc1_dims, fc2_dims, n_actions = 16, 32, 32, 4

    key = jax.random.PRNGKey(0)
    k_s1, k_s2, k1, k2, k3 = jax.random.split(key, 5)

    w1, b1 = init_linear(k1, input_dim, fc1_dims)
    w2, b2 = init_linear(k2, fc1_dims, fc2_dims)
    w3, b3 = init_linear(k3, fc2_dims, n_actions)
    params = dict(w1=w1, b1=b1, w2=w2, b2=b2, w3=w3, b3=b3)

    # Padding/casting done once, outside the forward path.
    params_f32 = prepare_params(params, compute_dtype=jnp.float32)
    params_bf16 = prepare_params(params)  # default bf16 compute, f32 accumulate

    # Case 1: tiny batch (single tile), f32 -> exact match with reference.
    state_small = jax.random.normal(k_s1, (8, input_dim), jnp.float32)
    out_small = jax.block_until_ready(
        policy_network_forward(state_small, params_f32))
    assert out_small.shape == (8, n_actions)
    assert jnp.allclose(out_small, _reference(state_small, params),
                        atol=1e-5, rtol=1e-5)

    # Case 2: batch=200 -> two tiles on the "parallel" axis, f32 exact.
    state_big = jax.random.normal(k_s2, (200, input_dim), jnp.float32)
    out_big = jax.block_until_ready(
        policy_network_forward(state_big, params_f32))
    assert out_big.shape == (200, n_actions)
    assert jnp.allclose(out_big, _reference(state_big, params),
                        atol=1e-5, rtol=1e-5)

    # Case 3: default bf16 inputs/weights (f32 MXU accumulation) -> loose tol.
    out_bf16 = jax.block_until_ready(
        policy_network_forward(state_big, params_bf16))
    assert out_bf16.shape == (200, n_actions)
    assert jnp.allclose(out_bf16, _reference(state_big, params),
                        atol=5e-2, rtol=5e-2)

    # TODO(synk): optimizer (Adam) / training step not implemented — forward only.
    print("KERNEL_OK")
</pallas_src>

<mosaic_0001>
module attributes {stable_mosaic.version = 11 : i64} {
  func.func @policy_mlp_kernel(%arg0: i32, %arg1: memref<16x16xf32, #tpu.memory_space<vmem>>, %arg2: memref<16x128xf32, #tpu.memory_space<vmem>>, %arg3: memref<1x128xf32, #tpu.memory_space<vmem>>, %arg4: memref<128x128xf32, #tpu.memory_space<vmem>>, %arg5: memref<1x128xf32, #tpu.memory_space<vmem>>, %arg6: memref<128x4xf32, #tpu.memory_space<vmem>>, %arg7: memref<1x4xf32, #tpu.memory_space<vmem>>, %arg8: memref<16x4xf32, #tpu.memory_space<vmem>>) attributes {dimension_semantics = [#tpu.dimension_semantics<parallel>], iteration_bounds = array<i64: 1>, scalar_prefetch = 0 : i64, scratch_operands = 0 : i64, tpu.core_type = #tpu.core_type<tc>, window_params = [{transform_indices = @transform_0, window_bounds = array<i64: 16, 16>}, {pipeline_mode = #tpu.pipeline_mode<synchronous>, transform_indices = @transform_1, window_bounds = array<i64: 16, 128>}, {pipeline_mode = #tpu.pipeline_mode<synchronous>, transform_indices = @transform_2, window_bounds = array<i64: 1, 128>}, {pipeline_mode = #tpu.pipeline_mode<synchronous>, transform_indices = @transform_3, window_bounds = array<i64: 128, 128>}, {pipeline_mode = #tpu.pipeline_mode<synchronous>, transform_indices = @transform_4, window_bounds = array<i64: 1, 128>}, {pipeline_mode = #tpu.pipeline_mode<synchronous>, transform_indices = @transform_5, window_bounds = array<i64: 128, 4>}, {pipeline_mode = #tpu.pipeline_mode<synchronous>, transform_indices = @transform_6, window_bounds = array<i64: 1, 4>}, {transform_indices = @transform_7, window_bounds = array<i64: 16, 4>}]} {
    %c0 = arith.constant 0 : index
    %c0_0 = arith.constant 0 : index
    %0 = vector.load %arg1[%c0, %c0_0] : memref<16x16xf32, #tpu.memory_space<vmem>>, vector<16x16xf32>
    %c0_1 = arith.constant 0 : index
    %c0_2 = arith.constant 0 : index
    %1 = vector.load %arg2[%c0_1, %c0_2] : memref<16x128xf32, #tpu.memory_space<vmem>>, vector<16x128xf32>
    %cst = arith.constant dense<0.000000e+00> : vector<16x128xf32>
    %2 = tpu.matmul %0, %1, %cst {dimension_numbers = #tpu.dot_dimension_numbers<[1], [0], [0], [1], [0, 0, 1, 1], [], []>} : vector<16x16xf32>, vector<16x128xf32>, vector<16x128xf32> -> vector<16x128xf32>
    %c0_3 = arith.constant 0 : index
    %c0_4 = arith.constant 0 : index
    %3 = vector.load %arg3[%c0_3, %c0_4] : memref<1x128xf32, #tpu.memory_space<vmem>>, vector<1x128xf32>
    %4 = vector.broadcast %3 : vector<1x128xf32> to vector<16x128xf32>
    %5 = arith.addf %2, %4 : vector<16x128xf32>
    %cst_5 = arith.constant 0.000000e+00 : f32
    %6 = vector.broadcast %cst_5 : f32 to vector<16x128xf32>
    %7 = arith.maximumf %5, %6 : vector<16x128xf32>
    %c0_6 = arith.constant 0 : index
    %c0_7 = arith.constant 0 : index
    %8 = vector.load %arg4[%c0_6, %c0_7] : memref<128x128xf32, #tpu.memory_space<vmem>>, vector<128x128xf32>
    %cst_8 = arith.constant dense<0.000000e+00> : vector<16x128xf32>
    %9 = tpu.matmul %7, %8, %cst_8 {dimension_numbers = #tpu.dot_dimension_numbers<[1], [0], [0], [1], [0, 0, 1, 1], [], []>} : vector<16x128xf32>, vector<128x128xf32>, vector<16x128xf32> -> vector<16x128xf32>
    %c0_9 = arith.constant 0 : index
    %c0_10 = arith.constant 0 : index
    %10 = vector.load %arg5[%c0_9, %c0_10] : memref<1x128xf32, #tpu.memory_space<vmem>>, vector<1x128xf32>
    %11 = vector.broadcast %10 : vector<1x128xf32> to vector<16x128xf32>
    %12 = arith.addf %9, %11 : vector<16x128xf32>
    %cst_11 = arith.constant 0.000000e+00 : f32
    %13 = vector.broadcast %cst_11 : f32 to vector<16x128xf32>
    %14 = arith.maximumf %12, %13 : vector<16x128xf32>
    %c0_12 = arith.constant 0 : index
    %c0_13 = arith.constant 0 : index
    %15 = vector.load %arg6[%c0_12, %c0_13] : memref<128x4xf32, #tpu.memory_space<vmem>>, vector<128x4xf32>
    %cst_14 = arith.constant dense<0.000000e+00> : vector<16x4xf32>
    %16 = tpu.matmul %14, %15, %cst_14 {dimension_numbers = #tpu.dot_dimension_numbers<[1], [0], [0], [1], [0, 0, 1, 1], [], []>} : vector<16x128xf32>, vector<128x4xf32>, vector<16x4xf32> -> vector<16x4xf32>
    %c0_15 = arith.constant 0 : index
    %c0_16 = arith.constant 0 : index
    %17 = vector.load %arg7[%c0_15, %c0_16] : memref<1x4xf32, #tpu.memory_space<vmem>>, vector<1x4xf32>
    %18 = vector.broadcast %17 : vector<1x4xf32> to vector<16x4xf32>
    %19 = arith.addf %16, %18 : vector<16x4xf32>
    %c0_17 = arith.constant 0 : index
    %c0_18 = arith.constant 0 : index
    %20 = vector.load %arg8[%c0_17, %c0_18] : memref<16x4xf32, #tpu.memory_space<vmem>>, vector<16x4xf32>
    tpu.vector_store %arg8[%c0_17, %c0_18], %19 {strides = array<i32>} : memref<16x4xf32, #tpu.memory_space<vmem>>, vector<16x4xf32>,
    return
  }
  func.func @transform_0(%arg0: i32) -> (i32, i32) {
    %c0_i32 = arith.constant 0 : i32
    %c0_i32_0 = arith.constant 0 : i32
    return %arg0, %c0_i32 : i32, i32
  }
  func.func @transform_1(%arg0: i32) -> (i32, i32) {
    %c0_i32 = arith.constant 0 : i32
    %c0_i32_0 = arith.constant 0 : i32
    %c0_i32_1 = arith.constant 0 : i32
    return %c0_i32, %c0_i32_0 : i32, i32
  }
  func.func @transform_2(%arg0: i32) -> (i32, i32) {
    %c0_i32 = arith.constant 0 : i32
    %c0_i32_0 = arith.constant 0 : i32
    %c0_i32_1 = arith.constant 0 : i32
    return %c0_i32, %c0_i32_0 : i32, i32
  }
  func.func @transform_3(%arg0: i32) -> (i32, i32) {
    %c0_i32 = arith.constant 0 : i32
    %c0_i32_0 = arith.constant 0 : i32
    %c0_i32_1 = arith.constant 0 : i32
    return %c0_i32, %c0_i32_0 : i32, i32
  }
  func.func @transform_4(%arg0: i32) -> (i32, i32) {
    %c0_i32 = arith.constant 0 : i32
    %c0_i32_0 = arith.constant 0 : i32
    %c0_i32_1 = arith.constant 0 : i32
    return %c0_i32, %c0_i32_0 : i32, i32
  }
  func.func @transform_5(%arg0: i32) -> (i32, i32) {
    %c0_i32 = arith.constant 0 : i32
    %c0_i32_0 = arith.constant 0 : i32
    %c0_i32_1 = arith.constant 0 : i32
    return %c0_i32, %c0_i32_0 : i32, i32
  }
  func.func @transform_6(%arg0: i32) -> (i32, i32) {
    %c0_i32 = arith.constant 0 : i32
    %c0_i32_0 = arith.constant 0 : i32
    %c0_i32_1 = arith.constant 0 : i32
    return %c0_i32, %c0_i32_0 : i32, i32
  }
  func.func @transform_7(%arg0: i32) -> (i32, i32) {
    %c0_i32 = arith.constant 0 : i32
    %c0_i32_0 = arith.constant 0 : i32
    return %arg0, %c0_i32 : i32, i32
  }
}

</mosaic_0001>

<bundles_post_ra>
// kernel: policy_network_forward.1
= control target key start
LH: loop header
LB: loop body
LE: loop exit
PB: predicated region body
PF: predicated region fallthrough
CT: control target
= control target key end

     0   :  { %vm37_vm0 = vcmask 130048   ;;  %vm319_vm1 = vcmask 31744   ;;  %s681_s1 = inlined_call_operand.vmem [shape: f32[16,128], index: 1, kind: input, shape index: {}]   ;;  %s682_s0 = inlined_call_operand.vmem [shape: f32[16,16], index: 0, kind: input, shape index: {}]   ;;  %s683_s3 = inlined_call_operand.vmem [shape: f32[128,128], index: 3, kind: input, shape index: {}]   ;;  %s684_s5 = inlined_call_operand.vmem [shape: f32[128,4], index: 5, kind: input, shape index: {}]   ;;  %s685_s2 = inlined_call_operand.vmem [shape: f32[1,128], index: 2, kind: input, shape index: {}]   ;;  %s686_s4 = inlined_call_operand.vmem [shape: f32[1,128], index: 4, kind: input, shape index: {}]   ;;  %s687_s6 = inlined_call_operand.vmem [shape: f32[1,4], index: 6, kind: input, shape index: {}]   ;;  %s688_s7 = inlined_call_operand.vmem [shape: f32[16,4], index: 7, kind: output, shape index: {}]  }
   0x1   :  { %v28_v0 = vld [vmem:[%s681_s1] sm:$0xff]  ;;  %v29_v1 = vld [vmem:[%s681_s1 + $0x8] sm:$0xff]  ;;  %v123_v7 = vld [vmem:[%s683_s3 + $0x10] sm:$0xff] }
   0x2   :  { %v26_v2 = vld [vmem:[%s682_s0] sm:$0xff]  ;;  %v448_v3 = vpack.c.bf16 %v29_v1, %v28_v0  ;;  %v122_v5 = vld [vmem:[%s683_s3 + $0x8] sm:$0xff]  ;;  %v124_v8 = vld [vmem:[%s683_s3 + $0x18] sm:$0xff] }
   0x3   :  { %375 = vmatprep.mubr.msk.f32.mxu0 %vm37_vm0, %v26_v2  ;;  %v121_v4 = vld [vmem:[%s683_s3] sm:$0xff]  ;;  %v456_v9 = vpack.c.bf16 %v124_v8, %v123_v7  ;;  %v126_v11 = vld [vmem:[%s683_s3 + $0x28] sm:$0xff]  ;;  %v127_v14 = vld [vmem:[%s683_s3 + $0x30] sm:$0xff] }
   0x4   :  { %v452_v6 = vpack.c.bf16 %v122_v5, %v121_v4  ;;  %449 = vmatprep.subr.bf16.mxu0 %v448_v3  ;;  %v125_v10 = vld [vmem:[%s683_s3 + $0x20] sm:$0xff]  ;;  %v27_v12 = vld [vmem:[%s682_s0 + $0x8] sm:$0xff]  ;;  %v128_v15 = vld [vmem:[%s683_s3 + $0x38] sm:$0xff] }
   0x5   :  { %451 = vmatpush3.bf16.msra.mxu0 %v448_v3  ;;  %v460_v13 = vpack.c.bf16 %v126_v11, %v125_v10  ;;  %v464_v16 = vpack.c.bf16 %v128_v15, %v127_v14  ;;  %v129_v17 = vld [vmem:[%s683_s3 + $0x40] sm:$0xff]  ;;  %v130_v18 = vld [vmem:[%s683_s3 + $0x48] sm:$0xff]  ;;  %v131_v20 = vld [vmem:[%s683_s3 + $0x50] sm:$0xff] }
   0x6   :  { %453 = vmatprep.subr.bf16.mxu1 %v452_v6  ;;  %v468_v19 = vpack.c.bf16 %v130_v18, %v129_v17  ;;  %v132_v21 = vld [vmem:[%s683_s3 + $0x58] sm:$0xff]  ;;  %v133_v23 = vld [vmem:[%s683_s3 + $0x60] sm:$0xff]  ;;  %v134_v24 = vld [vmem:[%s683_s3 + $0x68] sm:$0xff] }
   0x7   :  { %455 = vmatpush3.bf16.msra.mxu1 %v452_v6  ;;  %v472_v22 = vpack.c.bf16 %v132_v21, %v131_v20  ;;  %v476_v25 = vpack.c.bf16 %v134_v24, %v133_v23  ;;  %v135_v26 = vld [vmem:[%s683_s3 + $0x70] sm:$0xff]  ;;  %v136_v27 = vld [vmem:[%s683_s3 + $0x78] sm:$0xff]  ;;  %v221_v29 = vld [vmem:[%s684_s5] sm:$0xff] }
   0x8   :  { %457 = vmatprep.subr.bf16.mxu1 %v456_v9  ;;  %376 = vmatmul.mubr.msk.f32.vlgmr.msra.gmra.mrb[0].mxu0 %vm37_vm0, %v27_v12  ;;  %v480_v28 = vpack.c.bf16 %v136_v27, %v135_v26  ;;  %v222_v30 = vld [vmem:[%s684_s5 + $0x8] sm:$0xff]  ;;  %v223_v31 = vld [vmem:[%s684_s5 + $0x10] sm:$0xff]  ;;  %v224_v33 = vld [vmem:[%s684_s5 + $0x18] sm:$0xff] }
   0x9   :  { %v484_v32 = vpack.c.bf16 %v222_v30, %v221_v29  ;;  %v488_v34 = vpack.c.bf16 %v224_v33, %v223_v31  ;;  %v225_v35 = vld [vmem:[%s684_s5 + $0x20] sm:$0xff]  ;;  %v226_v36 = vld [vmem:[%s684_s5 + $0x28] sm:$0xff]  ;;  %v227_v38 = vld [vmem:[%s684_s5 + $0x30] sm:$0xff] }
   0xa   :  { %v492_v37 = vpack.c.bf16 %v226_v36, %v225_v35  ;;  %v228_v39 = vld [vmem:[%s684_s5 + $0x38] sm:$0xff]  ;;  %v229_v41 = vld [vmem:[%s684_s5 + $0x40] sm:$0xff]  ;;  %v230_v42 = vld [vmem:[%s684_s5 + $0x48] sm:$0xff] }
   0xb   :  { %459 = vmatpush3.bf16.msra.mxu1 %v456_v9  ;;  %485 = vmatprep.subr.bf16.mxu0 %v484_v32  ;;  %v496_v40 = vpack.c.bf16 %v228_v39, %v227_v38  ;;  %v500_v43 = vpack.c.bf16 %v230_v42, %v229_v41  ;;  %v231_v44 = vld [vmem:[%s684_s5 + $0x50] sm:$0xff]  ;;  %v232_v45 = vld [vmem:[%s684_s5 + $0x58] sm:$0xff]  ;;  %v233_v47 = vld [vmem:[%s684_s5 + $0x60] sm:$0xff] }
   0xc   :  { %461 = vmatprep.subr.bf16.mxu1 %v460_v13  ;;  %487 = vmatpush3.bf16.msra.mxu0 %v484_v32  ;;  %v504_v46 = vpack.c.bf16 %v232_v45, %v231_v44  ;;  %v234_v48 = vld [vmem:[%s684_s5 + $0x68] sm:$0xff]  ;;  %v326_v50 = vld [vmem:[%s685_s2] ss:$0 sm:$0xff]  ;;  %v235_v57 = vld [vmem:[%s684_s5 + $0x70] sm:$0xff] }
   0xd   :  { %489 = vmatprep.subr.bf16.mxu0 %v488_v34  ;;  %v508_v49 = vpack.c.bf16 %v234_v48, %v233_v47  ;;  %v236_v58 = vld [vmem:[%s684_s5 + $0x78] sm:$0xff]  ;;  %v329_v60 = vld [vmem:[%s686_s4] ss:$0 sm:$0xff] }
   0xe   :  { %v512_v59 = vpack.c.bf16 %v236_v58, %v235_v57  ;;  %v330_v3 = vld [vmem:[%s687_s6] ss:$0 sm:$0xff] }
   0xf   :  { %463 = vmatpush3.bf16.msra.mxu1 %v460_v13 }
  0x10   :  { %465 = vmatprep.subr.bf16.mxu1 %v464_v16  ;;  %491 = vmatpush3.bf16.msra.mxu0 %v488_v34 }
  0x11   :  { %493 = vmatprep.subr.bf16.mxu0 %v492_v37 }
  0x13   :  { %467 = vmatpush3.bf16.msra.mxu1 %v464_v16 }
  0x14   :  { %469 = vmatprep.subr.bf16.mxu1 %v468_v19  ;;  %495 = vmatpush3.bf16.msra.mxu0 %v492_v37 }
  0x15   :  { %497 = vmatprep.subr.bf16.mxu0 %v496_v40 }
  0x17   :  { %471 = vmatpush3.bf16.msra.mxu1 %v468_v19 }
  0x18   :  { %473 = vmatprep.subr.bf16.mxu1 %v472_v22  ;;  %499 = vmatpush3.bf16.msra.mxu0 %v496_v40 }
  0x19   :  { %501 = vmatprep.subr.bf16.mxu0 %v500_v43 }
  0x1b   :  { %475 = vmatpush3.bf16.msra.mxu1 %v472_v22 }
  0x1c   :  { %477 = vmatprep.subr.bf16.mxu1 %v476_v25  ;;  %503 = vmatpush3.bf16.msra.mxu0 %v500_v43 }
  0x1d   :  { %505 = vmatprep.subr.bf16.mxu0 %v504_v46 }
  0x1f   :  { %479 = vmatpush3.bf16.msra.mxu1 %v476_v25 }
  0x20   :  { %481 = vmatprep.subr.bf16.mxu1 %v480_v28  ;;  %507 = vmatpush3.bf16.msra.mxu0 %v504_v46 }
  0x21   :  { %509 = vmatprep.subr.bf16.mxu0 %v508_v49 }
  0x23   :  { %483 = vmatpush3.bf16.msra.mxu1 %v480_v28 }
  0x24   :  { %511 = vmatpush3.bf16.msra.mxu0 %v508_v49 }
  0x25   :  { %513 = vmatprep.subr.bf16.mxu0 %v512_v59 }
  0x28   :  { %515 = vmatpush3.bf16.msra.mxu0 %v512_v59 }
  0xdb   :  { %v377_v51 = vpop.f32.mrb[0].mxu0 }
  0xdc   :  { %v116_v52 = vadd.f32 %v377_v51, %v326_v50  ;;  %v110_v53 = vpop.f32.mrb[1].mxu0 }
  0xdd   :  { %v111_v54 = vadd.f32 %v326_v50, %v110_v53 }
  0xde   :  { %v120_v56 = vmax.f32 %v116_v52, 0.0 }
  0xdf   :  { %v119_v55 = vmax.f32 %v111_v54, 0.0 }
  0xe1   :  { %410 = vmatprep.mubr.f32.mxu1 %v119_v55 }
  0xe2   :  { %411 = vmatmul.mubr.f32.vlgmr.msra.gmra.mrb[0].mxu1 %v120_v56 }
 0x1b5   :  { %v412_v61 = vpop.f32.mrb[0].mxu1 }
 0x1b6   :  { %v216_v62 = vadd.f32 %v412_v61, %v329_v60  ;;  %v210_v63 = vpop.f32.mrb[1].mxu1 }
 0x1b7   :  { %v211_v0 = vadd.f32 %v329_v60, %v210_v63 }
 0x1b8   :  { %v220_v2 = vmax.f32 %v216_v62, 0.0 }
 0x1b9   :  { %v219_v1 = vmax.f32 %v211_v0, 0.0 }
 0x1bb   :  { %445 = vmatprep.mubr.f32.mxu0 %v219_v1 }
 0x1bc   :  { %446 = vmatmul.mubr.f32.vlgmr.msra.gmra.mrb[2].mxu0 %v220_v2 }
 0x28f   :  { %v447_v4 = vpop.f32.mrb[2].mxu0 }
 0x290   :  { %v316_v5 = vadd.f32 %v447_v4, %v330_v3  ;;  %v310_v6 = vpop.f32.mrb[3].mxu0 }
 0x291   :  { %v311_v7 = vadd.f32 %v330_v3, %v310_v6 }
 0x292   :  { %321 = vst.msk [vmem:[%s688_s7 + $0x8] sm:$0xff] %vm319_vm1, %v316_v5 }
 0x293   :  { %320 = vst.msk [vmem:[%s688_s7] sm:$0xff] %vm319_vm1, %v311_v7 }

</bundles_post_ra>
